<compile_context>
chip_gen: v7x
topology: tpu7x:2x2x1
jax: 0.10.0
libtpu: 0.0.40
codegen_flags: <defaults>
</compile_context>

<pallas_src>
import functools

import jax
import jax.numpy as jnp
from jax.experimental import pallas as pl
from jax.experimental.pallas import tpu as pltpu


# ---------------------------------------------------------------------------
# Kernels
# ---------------------------------------------------------------------------

def dense_fusion_kernel_2d(params_ref, image_ref, depth_ref, bev_ref,
                           fused_ref, points_ref, *bev_sem,
                           TH, W, C_img, bev_via_dma, img_native):
    """Native NCHW path: blocks are (1, C, TH, W) with W a multiple of 128."""
    # params_ref (SMEM, f32[6]): [1/fx, 1/fy, cx, cy, w', b']
    inv_fx = params_ref[0]
    inv_fy = params_ref[1]
    cx = params_ref[2]
    cy = params_ref[3]
    w_p = params_ref[4]
    b_p = params_ref[5]

    bev_cp = None
    if bev_via_dma:
        # Copy the BEV tile HBM -> fused output VMEM block on the DMA engine,
        # overlapped with the vector work below (no vld/vst slots used).
        n = pl.program_id(0)
        row_start = pl.multiple_of(pl.program_id(1) * TH, TH)
        bev_cp = pltpu.make_async_copy(
            bev_ref.at[n, :, pl.ds(row_start, TH), :],
            fused_ref.at[0, C_img:, :, :],
            bev_sem[0].at[0])
        bev_cp.start()

    row0 = (pl.program_id(1) * TH).astype(jnp.float32)
    d = depth_ref[0, 0, :, :].astype(jnp.float32)            # (TH, W)
    valid = d > 0.0

    # x runs over rows (H), y over columns (W) -- faithful to the PyTorch code,
    # which indexes np.where(depth > 0) as (x, y) = (row, col).
    x_coord = jax.lax.broadcasted_iota(jnp.float32, (TH, W), 0) + row0
    y_coord = jax.lax.broadcasted_iota(jnp.float32, (TH, W), 1)

    p3z = jnp.where(valid, d, 0.0)
    points_ref[0, 0, :, :] = (x_coord - cx) * p3z * inv_fx
    points_ref[0, 1, :, :] = (y_coord - cy) * p3z * inv_fy
    points_ref[0, 2, :, :] = p3z

    # Folded per-point MLP (single affine), zeroed where there is no LIDAR point.
    if img_native:                                            # bf16 VALU path
        img = image_ref[0]
        out = jnp.where(valid[None, :, :],
                        w_p.astype(img.dtype) * img + b_p.astype(img.dtype),
                        jnp.zeros((), img.dtype))
    else:
        out = jnp.where(valid[None, :, :],
                        w_p * image_ref[0].astype(jnp.float32) + b_p, 0.0)
    fused_ref[0, :C_img, :, :] = out.astype(fused_ref.dtype)

    if bev_via_dma:
        bev_cp.wait()
    else:
        fused_ref[0, C_img:, :, :] = bev_ref[0].astype(fused_ref.dtype)


def dense_fusion_kernel_flat(params_ref, coords_ref, image_ref, depth_ref, bev_ref,
                             fused_ref, points_ref, *bev_sem,
                             TILE, C_img, bev_via_dma, img_native):
    """Lane-dense path: spatial dims flattened to H*W, tiled in multiples of 128.
    Pixel coordinates are streamed in via coords_ref (2, TILE) = [row, col]."""
    inv_fx = params_ref[0]
    inv_fy = params_ref[1]
    cx = params_ref[2]
    cy = params_ref[3]
    w_p = params_ref[4]
    b_p = params_ref[5]

    bev_cp = None
    if bev_via_dma:
        n = pl.program_id(0)
        start = pl.multiple_of(pl.program_id(1) * TILE, 128)
        bev_cp = pltpu.make_async_copy(
            bev_ref.at[n, :, pl.ds(start, TILE)],
            fused_ref.at[0, C_img:, :],
            bev_sem[0].at[0])
        bev_cp.start()

    x_coord = coords_ref[0:1, :]                              # (1, TILE) row idx
    y_coord = coords_ref[1:2, :]                              # (1, TILE) col idx
    d = depth_ref[0, :, :].astype(jnp.float32)                # (1, TILE)
    valid = d > 0.0

    p3z = jnp.where(valid, d, 0.0)
    points_ref[0, 0:1, :] = (x_coord - cx) * p3z * inv_fx
    points_ref[0, 1:2, :] = (y_coord - cy) * p3z * inv_fy
    points_ref[0, 2:3, :] = p3z

    if img_native:                                            # bf16 VALU path
        img = image_ref[0]                                    # (C_img, TILE)
        out = jnp.where(valid,
                        w_p.astype(img.dtype) * img + b_p.astype(img.dtype),
                        jnp.zeros((), img.dtype))
    else:
        out = jnp.where(valid, w_p * image_ref[0].astype(jnp.float32) + b_p, 0.0)
    fused_ref[0, :C_img, :] = out.astype(fused_ref.dtype)

    if bev_via_dma:
        bev_cp.wait()
    else:
        fused_ref[0, C_img:, :] = bev_ref[0].astype(fused_ref.dtype)


# ---------------------------------------------------------------------------
# Wrapper helpers
# ---------------------------------------------------------------------------

def _cdiv(a, b):
    return -(-a // b)


def _round_up(x, m):
    return ((x + m - 1) // m) * m


def _vmem_capacity_bytes():
    try:
        info = pltpu.get_tpu_info()
        cap = getattr(info, "vmem_capacity_bytes", None)
        if cap:
            return int(cap)
    except Exception:
        pass
    return 64 << 20  # conservative default (v7x per-TensorCore)


def _has_bf16_valu():
    """bf16 VALU is present on v6e / v7x, absent on v5e and earlier."""
    try:
        kind = jax.devices()[0].device_kind.lower()
    except Exception:
        return False
    for tag in ("v5 lite", "v5e", "v5litepod", "v5p", "v4", "v3", "v2"):
        if tag in kind:
            return False
    return True


def _choose_tile(dim, unit, per_unit_bytes, budget_bytes, n_batch, min_steps):
    """Largest tile (multiple of `unit`) whose double-buffered working set fits
    `budget_bytes`, preferring tiles that leave >= min_steps total grid steps."""
    if dim <= unit:
        return dim                       # full-dim block (always legal)
    total_units = _cdiv(dim, unit)
    max_fit = max(min(int(budget_bytes // max(per_unit_bytes, 1)), total_units), 1)
    exact = (dim % unit == 0)
    cands = [u for u in range(1, max_fit + 1)
             if (not exact) or (total_units % u == 0)]
    if not cands:
        cands = [1]
    pref = [u for u in cands if n_batch * _cdiv(total_units, u) >= min_steps]
    u = max(pref) if pref else max(cands)
    return u * unit


# ---------------------------------------------------------------------------
# Forward wrapper
# ---------------------------------------------------------------------------

def dense_fusion_forward(image, depth, bev, params):
    """image: (N, C_img, H, W); depth: (N, 1, H, W); bev: (N, C_bev, H, W);
    params: f32[8] = [fx_d, fy_d, cx_d, cy_d, w1, b1, w2, b2].

    Returns (fused_feature (N, C_img + C_bev, H, W), points (N, 3, H, W))."""
    N, C_img, H, W = image.shape
    C_bev = bev.shape[1]
    C_out = C_img + C_bev
    out_dtype = jnp.result_type(image.dtype, bev.dtype)
    isz_img = image.dtype.itemsize
    isz_dep = depth.dtype.itemsize
    isz_bev = bev.dtype.itemsize
    isz_out = jnp.dtype(out_dtype).itemsize

    # Generation-aware VMEM budgeting.
    vmem_cap = _vmem_capacity_bytes()
    if vmem_cap >= (100 << 20):              # v5e / v6e: 128 MiB VMEM, 1 TC
        budget, vmem_hard_cap, min_steps = 44 << 20, 96 << 20, 2
    else:                                    # v7x: 64 MiB per TC, 2 TCs share grid
        budget, vmem_hard_cap, min_steps = 18 << 20, 40 << 20, 4

    # Fold intrinsics + the two scalar affines: kernel sees [1/fx, 1/fy, cx, cy, w', b'].
    params = jnp.asarray(params, dtype=jnp.float32)
    fx, fy, cx, cy, w1, b1, w2, b2 = (params[i] for i in range(8))
    kparams = jnp.stack([1.0 / fx, 1.0 / fy, cx, cy, w1 * w2, w2 * b1 + b2])

    # bf16-native affine only where the VALU supports it and it avoids casts.
    img_native = bool(_has_bf16_valu()
                      and image.dtype == jnp.bfloat16
                      and jnp.dtype(out_dtype) == jnp.dtype(jnp.bfloat16))

    common_cp = dict(dimension_semantics=("parallel", "parallel"))

    if W % 128 == 0:
        # ------------------------- native NCHW row-tiled path -------------------------
        sub = max(8, 32 // min(isz_img, isz_dep, isz_bev, isz_out))   # dtype-aware rows
        per_unit = 2 * sub * W * (C_img * isz_img + isz_dep + C_bev * isz_bev
                                  + C_out * isz_out + 3 * 4)
        TH = _choose_tile(H, sub, per_unit, budget, N, min_steps)
        steps_h = _cdiv(H, TH)
        bev_via_dma = (bev.dtype == out_dtype) and (H % TH == 0)
        working = per_unit * _cdiv(TH, sub)
        vmem_limit = int(min(max(1.4 * working + (2 << 20), 16 << 20), vmem_hard_cap))

        kernel = functools.partial(dense_fusion_kernel_2d, TH=TH, W=W, C_img=C_img,
                                   bev_via_dma=bev_via_dma, img_native=img_native)

        in_specs = [
            pl.BlockSpec(memory_space=pltpu.MemorySpace.SMEM),                # params
            pl.BlockSpec((1, C_img, TH, W), lambda n, h: (n, 0, h, 0)),       # image
            pl.BlockSpec((1, 1, TH, W), lambda n, h: (n, 0, h, 0)),           # depth
            (pl.BlockSpec(memory_space=pl.ANY) if bev_via_dma
             else pl.BlockSpec((1, C_bev, TH, W), lambda n, h: (n, 0, h, 0))),
        ]
        out_specs = (
            pl.BlockSpec((1, C_out, TH, W), lambda n, h: (n, 0, h, 0)),
            pl.BlockSpec((1, 3, TH, W), lambda n, h: (n, 0, h, 0)),
        )
        scratch_shapes = [pltpu.SemaphoreType.DMA((1,))] if bev_via_dma else []

        bytes_accessed = int(N * H * W * (C_img * isz_img + isz_dep + C_bev * isz_bev
                                          + C_out * isz_out + 12))
        cost = pl.CostEstimate(flops=int(N * H * W * (3 * C_img + 10)),
                               transcendentals=0, bytes_accessed=bytes_accessed)

        fused, points = pl.pallas_call(
            kernel,
            out_shape=(jax.ShapeDtypeStruct((N, C_out, H, W), out_dtype),
                       jax.ShapeDtypeStruct((N, 3, H, W), jnp.float32)),
            grid=(N, steps_h),
            in_specs=in_specs,
            out_specs=out_specs,
            scratch_shapes=scratch_shapes,
            compiler_params=pltpu.CompilerParams(vmem_limit_bytes=vmem_limit,
                                                 **common_cp),
            cost_estimate=cost,
        )(kparams, image, depth, bev)
        return fused, points

    # --------------------------- lane-dense flattened path ---------------------------
    HW = H * W
    unit = 128
    pad8 = lambda c: _round_up(max(c, 1), 8)
    per_unit = 2 * unit * (pad8(C_img) * isz_img + 8 * isz_dep + pad8(C_bev) * isz_bev
                           + pad8(C_out) * isz_out + 8 * 4 + 8 * 4)
    TILE = _choose_tile(HW, unit, per_unit, budget, N, min_steps)
    steps_t = _cdiv(HW, TILE)
    bev_via_dma = (bev.dtype == out_dtype) and (HW % TILE == 0)
    working = per_unit * _cdiv(TILE, unit)
    vmem_limit = int(min(max(1.4 * working + (2 << 20), 16 << 20), vmem_hard_cap))

    image_f = image.reshape(N, C_img, HW)
    depth_f = depth.reshape(N, 1, HW)
    bev_f = bev.reshape(N, C_bev, HW)
    # Tiny (2, H*W) f32 coordinate planes: [row (x), col (y)] per flattened pixel.
    x_plane = jnp.broadcast_to(jnp.arange(H, dtype=jnp.float32)[:, None], (H, W))
    y_plane = jnp.broadcast_to(jnp.arange(W, dtype=jnp.float32)[None, :], (H, W))
    coords = jnp.stack([x_plane.reshape(-1), y_plane.reshape(-1)], axis=0)

    kernel = functools.partial(dense_fusion_kernel_flat, TILE=TILE, C_img=C_img,
                               bev_via_dma=bev_via_dma, img_native=img_native)

    in_specs = [
        pl.BlockSpec(memory_space=pltpu.MemorySpace.SMEM),               # params
        pl.BlockSpec((2, TILE), lambda n, t: (0, t)),                    # coords
        pl.BlockSpec((1, C_img, TILE), lambda n, t: (n, 0, t)),          # image
        pl.BlockSpec((1, 1, TILE), lambda n, t: (n, 0, t)),              # depth
        (pl.BlockSpec(memory_space=pl.ANY) if bev_via_dma
         else pl.BlockSpec((1, C_bev, TILE), lambda n, t: (n, 0, t))),   # bev
    ]
    out_specs = (
        pl.BlockSpec((1, C_out, TILE), lambda n, t: (n, 0, t)),
        pl.BlockSpec((1, 3, TILE), lambda n, t: (n, 0, t)),
    )
    scratch_shapes = [pltpu.SemaphoreType.DMA((1,))] if bev_via_dma else []

    bytes_accessed = int(N * HW * (C_img * isz_img + isz_dep + C_bev * isz_bev
                                   + C_out * isz_out + 12 + 8))
    cost = pl.CostEstimate(flops=int(N * HW * (3 * C_img + 10)),
                           transcendentals=0, bytes_accessed=bytes_accessed)

    fused, points = pl.pallas_call(
        kernel,
        out_shape=(jax.ShapeDtypeStruct((N, C_out, HW), out_dtype),
                   jax.ShapeDtypeStruct((N, 3, HW), jnp.float32)),
        grid=(N, steps_t),
        in_specs=in_specs,
        out_specs=out_specs,
        scratch_shapes=scratch_shapes,
        compiler_params=pltpu.CompilerParams(vmem_limit_bytes=vmem_limit,
                                             **common_cp),
        cost_estimate=cost,
    )(kparams, coords, image_f, depth_f, bev_f)
    return fused.reshape(N, C_out, H, W), points.reshape(N, 3, H, W)


# ---------------------------------------------------------------------------
# Pure-JAX reference (same semantics) for correctness checking
# ---------------------------------------------------------------------------

def reference_forward(image, depth, bev, params):
    fx, fy, cx, cy, w1, b1, w2, b2 = [jnp.float32(p) for p in params]
    xs = jnp.arange(image.shape[2], dtype=jnp.float32)[:, None]   # x over rows (H)
    ys = jnp.arange(image.shape[3], dtype=jnp.float32)[None, :]   # y over cols (W)
    d = depth[:, 0].astype(jnp.float32)                           # (N, H, W)
    valid = d > 0.0
    p3x = jnp.where(valid, (xs - cx) * d / fx, 0.0)
    p3y = jnp.where(valid, (ys - cy) * d / fy, 0.0)
    p3z = jnp.where(valid, d, 0.0)
    points = jnp.stack([p3x, p3y, p3z], axis=1)                   # (N, 3, H, W)
    img_out = jnp.where(valid[:, None],
                        w2 * (w1 * image.astype(jnp.float32) + b1) + b2, 0.0)
    fused = jnp.concatenate([img_out.astype(image.dtype), bev], axis=1)
    return fused, points


# ---------------------------------------------------------------------------
# Demo / self-check
# ---------------------------------------------------------------------------

if __name__ == "__main__":
    key = jax.random.PRNGKey(0)

    def run_case(case_key, N, C_img, C_bev, H, W, bev_dtype=jnp.float32):
        k_img, k_dep, k_bev = jax.random.split(case_key, 3)
        image = jax.random.normal(k_img, (N, C_img, H, W), dtype=jnp.float32)
        # Roughly half the pixels get no depth (== 0) to exercise the valid mask.
        depth = jnp.maximum(jax.random.normal(k_dep, (N, 1, H, W), dtype=jnp.float32), 0.0)
        bev = jax.random.normal(k_bev, (N, C_bev, H, W), dtype=jnp.float32).astype(bev_dtype)

        fx_d, fy_d = 10.0, 12.0
        cx_d, cy_d = (H - 1) / 2.0, (W - 1) / 2.0
        w1, b1 = 0.5, 0.1        # Linear(k, k), k = 1
        w2, b2 = -0.25, 0.05     # Linear(k, 1)
        params = jnp.array([fx_d, fy_d, cx_d, cy_d, w1, b1, w2, b2], dtype=jnp.float32)

        fused, points = dense_fusion_forward(image, depth, bev, params)
        jax.block_until_ready((fused, points))

        fused_r, points_r = reference_forward(image, depth, bev, params)
        assert fused.shape == (N, C_img + C_bev, H, W)
        assert points.shape == (N, 3, H, W)
        assert jnp.allclose(fused.astype(jnp.float32), fused_r.astype(jnp.float32),
                            atol=1e-4, rtol=1e-4)
        assert jnp.allclose(points, points_r, atol=1e-4, rtol=1e-4)

    k1, k2 = jax.random.split(key)
    # Case 1: narrow W (16) -> lane-dense flattened layout + BEV DMA-into-output path.
    run_case(k1, N=2, C_img=4, C_bev=4, H=16, W=16)
    # Case 2: W multiple of 128 -> native NCHW row-tiled path; bf16 BEV exercises the
    # dtype-converting vector fallback for the BEV pass-through.
    run_case(k2, N=1, C_img=3, C_bev=5, H=16, W=128, bev_dtype=jnp.bfloat16)

    # TODO(synk): the PyTorch forward never defines `fused_feature` / the k-NN
    # "selection_criterion" path; implemented the documented per-pixel fusion.
    print("KERNEL_OK")
</pallas_src>

<mosaic_0001>
module attributes {stable_mosaic.version = 11 : i64} {
  func.func @dense_fusion_kernel_flat(%arg0: i32, %arg1: i32, %arg2: memref<6xf32, #tpu.memory_space<smem>>, %arg3: memref<2x128xf32, #tpu.memory_space<vmem>>, %arg4: memref<1x4x128xf32, #tpu.memory_space<vmem>>, %arg5: memref<1x1x128xf32, #tpu.memory_space<vmem>>, %arg6: memref<2x4x256xf32, #tpu.memory_space<any>>, %arg7: memref<1x8x128xf32, #tpu.memory_space<vmem>>, %arg8: memref<1x3x128xf32, #tpu.memory_space<vmem>>, %arg9: memref<1x!tpu.dma_semaphore, #tpu.memory_space<semaphore_mem>>) attributes {dimension_semantics = [#tpu.dimension_semantics<parallel>, #tpu.dimension_semantics<parallel>], iteration_bounds = array<i64: 2, 2>, scalar_prefetch = 0 : i64, scratch_operands = 1 : i64, tpu.core_type = #tpu.core_type<tc>, window_params = [{transform_indices = @transform_0, window_bounds = array<i64: 6>}, {transform_indices = @transform_1, window_bounds = array<i64: 2, 128>}, {transform_indices = @transform_2, window_bounds = array<i64: 1, 4, 128>}, {transform_indices = @transform_3, window_bounds = array<i64: 1, 1, 128>}, {}, {transform_indices = @transform_5, window_bounds = array<i64: 1, 8, 128>}, {transform_indices = @transform_6, window_bounds = array<i64: 1, 3, 128>}]} {
    %c0 = arith.constant 0 : index
    %0 = memref.load %arg2[%c0] : memref<6xf32, #tpu.memory_space<smem>>
    %c1 = arith.constant 1 : index
    %1 = memref.load %arg2[%c1] : memref<6xf32, #tpu.memory_space<smem>>
    %c2 = arith.constant 2 : index
    %2 = memref.load %arg2[%c2] : memref<6xf32, #tpu.memory_space<smem>>
    %c3 = arith.constant 3 : index
    %3 = memref.load %arg2[%c3] : memref<6xf32, #tpu.memory_space<smem>>
    %c4 = arith.constant 4 : index
    %4 = memref.load %arg2[%c4] : memref<6xf32, #tpu.memory_space<smem>>
    %c5 = arith.constant 5 : index
    %5 = memref.load %arg2[%c5] : memref<6xf32, #tpu.memory_space<smem>>
    %c128_i32 = arith.constant 128 : i32
    %6 = arith.muli %arg1, %c128_i32 : i32
    %7 = tpu.assume_multiple %6, 128 : i32
    %c0_i32 = arith.constant 0 : i32
    %c0_i32_0 = arith.constant 0 : i32
    %c0_i32_1 = arith.constant 0 : i32
    %8 = tpu.memref_slice %arg6[%arg0, %c0_i32_1, %7] : memref<2x4x256xf32, #tpu.memory_space<any>> -> memref<1x4x128xf32, #tpu.memory_space<any>>
    %9 = tpu.memref_squeeze %8 : memref<1x4x128xf32, #tpu.memory_space<any>> -> memref<4x128xf32, #tpu.memory_space<any>>
    %c4_i32 = arith.constant 4 : i32
    %c0_i32_2 = arith.constant 0 : i32
    %10 = tpu.memref_slice %arg7[%c0_i32, %c4_i32, %c0_i32_2] : memref<1x8x128xf32, #tpu.memory_space<vmem>> -> memref<1x4x128xf32, #tpu.memory_space<vmem>>
    %11 = tpu.memref_squeeze %10 : memref<1x4x128xf32, #tpu.memory_space<vmem>> -> memref<4x128xf32, #tpu.memory_space<vmem>>
    %12 = tpu.memref_slice %arg9[%c0_i32_0] : memref<1x!tpu.dma_semaphore, #tpu.memory_space<semaphore_mem>> -> memref<1x!tpu.dma_semaphore, #tpu.memory_space<semaphore_mem>>
    %13 = tpu.memref_squeeze %12 : memref<1x!tpu.dma_semaphore, #tpu.memory_space<semaphore_mem>> -> memref<!tpu.dma_semaphore, #tpu.memory_space<semaphore_mem>>
    tpu.enqueue_dma source(%9 : memref<4x128xf32, #tpu.memory_space<any>>) target(%11 : memref<4x128xf32, #tpu.memory_space<vmem>>) target_semaphore(%13 : memref<!tpu.dma_semaphore, #tpu.memory_space<semaphore_mem>>)
    %c0_3 = arith.constant 0 : index
    %c0_4 = arith.constant 0 : index
    %14 = vector.load %arg3[%c0_3, %c0_4] : memref<2x128xf32, #tpu.memory_space<vmem>>, vector<1x128xf32>
    %c1_5 = arith.constant 1 : index
    %c0_6 = arith.constant 0 : index
    %15 = vector.load %arg3[%c1_5, %c0_6] : memref<2x128xf32, #tpu.memory_space<vmem>>, vector<1x128xf32>
    %c0_7 = arith.constant 0 : index
    %c0_8 = arith.constant 0 : index
    %c0_9 = arith.constant 0 : index
    %16 = vector.load %arg5[%c0_7, %c0_8, %c0_9] : memref<1x1x128xf32, #tpu.memory_space<vmem>>, vector<1x1x128xf32>
    %17 = vector.shape_cast %16 : vector<1x1x128xf32> to vector<1x128xf32>
    %cst = arith.constant 0.000000e+00 : f32
    %18 = vector.broadcast %cst : f32 to vector<1x128xf32>
    %19 = arith.cmpf ogt, %17, %18 : vector<1x128xf32>
    %cst_10 = arith.constant 0.000000e+00 : f32
    %20 = vector.broadcast %cst_10 : f32 to vector<1x128xf32>
    %21 = arith.select %19, %17, %20 : vector<1x128xi1>, vector<1x128xf32>
    %22 = vector.broadcast %2 : f32 to vector<1x128xf32>
    %23 = arith.subf %14, %22 : vector<1x128xf32>
    %24 = arith.mulf %23, %21 : vector<1x128xf32>
    %25 = vector.broadcast %0 : f32 to vector<1x128xf32>
    %26 = arith.mulf %24, %25 : vector<1x128xf32>
    %c0_11 = arith.constant 0 : index
    %c0_12 = arith.constant 0 : index
    %c0_13 = arith.constant 0 : index
    %27 = vector.load %arg8[%c0_11, %c0_12, %c0_13] : memref<1x3x128xf32, #tpu.memory_space<vmem>>, vector<1x1x128xf32>
    %28 = vector.shape_cast %27 : vector<1x1x128xf32> to vector<1x128xf32>
    %29 = vector.shape_cast %26 : vector<1x128xf32> to vector<1x1x128xf32>
    tpu.vector_store %arg8[%c0_11, %c0_12, %c0_13], %29 {strides = array<i32>} : memref<1x3x128xf32, #tpu.memory_space<vmem>>, vector<1x1x128xf32>,
    %30 = vector.broadcast %3 : f32 to vector<1x128xf32>
    %31 = arith.subf %15, %30 : vector<1x128xf32>
    %32 = arith.mulf %31, %21 : vector<1x128xf32>
    %33 = vector.broadcast %1 : f32 to vector<1x128xf32>
    %34 = arith.mulf %32, %33 : vector<1x128xf32>
    %c0_14 = arith.constant 0 : index
    %c1_15 = arith.constant 1 : index
    %c0_16 = arith.constant 0 : index
    %35 = vector.load %arg8[%c0_14, %c1_15, %c0_16] : memref<1x3x128xf32, #tpu.memory_space<vmem>>, vector<1x1x128xf32>
    %36 = vector.shape_cast %35 : vector<1x1x128xf32> to vector<1x128xf32>
    %37 = vector.shape_cast %34 : vector<1x128xf32> to vector<1x1x128xf32>
    tpu.vector_store %arg8[%c0_14, %c1_15, %c0_16], %37 {strides = array<i32>} : memref<1x3x128xf32, #tpu.memory_space<vmem>>, vector<1x1x128xf32>,
    %c0_17 = arith.constant 0 : index
    %c2_18 = arith.constant 2 : index
    %c0_19 = arith.constant 0 : index
    %38 = vector.load %arg8[%c0_17, %c2_18, %c0_19] : memref<1x3x128xf32, #tpu.memory_space<vmem>>, vector<1x1x128xf32>
    %39 = vector.shape_cast %38 : vector<1x1x128xf32> to vector<1x128xf32>
    %40 = vector.shape_cast %21 : vector<1x128xf32> to vector<1x1x128xf32>
    tpu.vector_store %arg8[%c0_17, %c2_18, %c0_19], %40 {strides = array<i32>} : memref<1x3x128xf32, #tpu.memory_space<vmem>>, vector<1x1x128xf32>,
    %c0_20 = arith.constant 0 : index
    %c0_21 = arith.constant 0 : index
    %c0_22 = arith.constant 0 : index
    %41 = vector.load %arg4[%c0_20, %c0_21, %c0_22] : memref<1x4x128xf32, #tpu.memory_space<vmem>>, vector<1x4x128xf32>
    %42 = vector.shape_cast %41 : vector<1x4x128xf32> to vector<4x128xf32>
    %43 = vector.broadcast %4 : f32 to vector<4x128xf32>
    %44 = arith.mulf %43, %42 : vector<4x128xf32>
    %45 = vector.broadcast %5 : f32 to vector<4x128xf32>
    %46 = arith.addf %44, %45 : vector<4x128xf32>
    %cst_23 = arith.constant 0.000000e+00 : f32
    %47 = vector.shape_cast %19 : vector<1x128xi1> to vector<1x128xi1>
    %48 = vector.broadcast %47 : vector<1x128xi1> to vector<4x128xi1>
    %49 = vector.broadcast %cst_23 : f32 to vector<4x128xf32>
    %50 = arith.select %48, %46, %49 : vector<4x128xi1>, vector<4x128xf32>
    %c0_24 = arith.constant 0 : index
    %c0_25 = arith.constant 0 : index
    %c0_26 = arith.constant 0 : index
    %51 = vector.load %arg7[%c0_24, %c0_25, %c0_26] : memref<1x8x128xf32, #tpu.memory_space<vmem>>, vector<1x4x128xf32>
    %52 = vector.shape_cast %51 : vector<1x4x128xf32> to vector<4x128xf32>
    %53 = vector.shape_cast %50 : vector<4x128xf32> to vector<1x4x128xf32>
    tpu.vector_store %arg7[%c0_24, %c0_25, %c0_26], %53 {strides = array<i32>} : memref<1x8x128xf32, #tpu.memory_space<vmem>>, vector<1x4x128xf32>,
    %c0_i32_27 = arith.constant 0 : i32
    %c0_i32_28 = arith.constant 0 : i32
    %c0_i32_29 = arith.constant 0 : i32
    %54 = tpu.memref_slice %arg6[%arg0, %c0_i32_29, %7] : memref<2x4x256xf32, #tpu.memory_space<any>> -> memref<1x4x128xf32, #tpu.memory_space<any>>
    %55 = tpu.memref_squeeze %54 : memref<1x4x128xf32, #tpu.memory_space<any>> -> memref<4x128xf32, #tpu.memory_space<any>>
    %c4_i32_30 = arith.constant 4 : i32
    %c0_i32_31 = arith.constant 0 : i32
    %56 = tpu.memref_slice %arg7[%c0_i32_27, %c4_i32_30, %c0_i32_31] : memref<1x8x128xf32, #tpu.memory_space<vmem>> -> memref<1x4x128xf32, #tpu.memory_space<vmem>>
    %57 = tpu.memref_squeeze %56 : memref<1x4x128xf32, #tpu.memory_space<vmem>> -> memref<4x128xf32, #tpu.memory_space<vmem>>
    %58 = tpu.memref_slice %arg9[%c0_i32_28] : memref<1x!tpu.dma_semaphore, #tpu.memory_space<semaphore_mem>> -> memref<1x!tpu.dma_semaphore, #tpu.memory_space<semaphore_mem>>
    %59 = tpu.memref_squeeze %58 : memref<1x!tpu.dma_semaphore, #tpu.memory_space<semaphore_mem>> -> memref<!tpu.dma_semaphore, #tpu.memory_space<semaphore_mem>>
    tpu.wait_dma2 semaphore(%59 : memref<!tpu.dma_semaphore, #tpu.memory_space<semaphore_mem>>) src(%55 : memref<4x128xf32, #tpu.memory_space<any>>) dst(%57 : memref<4x128xf32, #tpu.memory_space<vmem>>)
    return
  }
  func.func @transform_0(%arg0: i32, %arg1: i32) -> i32 {
    %c0_i32 = arith.constant 0 : i32
    %c0_i32_0 = arith.constant 0 : i32
    return %c0_i32 : i32
  }
  func.func @transform_1(%arg0: i32, %arg1: i32) -> (i32, i32) {
    %c0_i32 = arith.constant 0 : i32
    %c0_i32_0 = arith.constant 0 : i32
    return %c0_i32, %arg1 : i32, i32
  }
  func.func @transform_2(%arg0: i32, %arg1: i32) -> (i32, i32, i32) {
    %c0_i32 = arith.constant 0 : i32
    %c0_i32_0 = arith.constant 0 : i32
    return %arg0, %c0_i32, %arg1 : i32, i32, i32
  }
  func.func @transform_3(%arg0: i32, %arg1: i32) -> (i32, i32, i32) {
    %c0_i32 = arith.constant 0 : i32
    %c0_i32_0 = arith.constant 0 : i32
    return %arg0, %c0_i32, %arg1 : i32, i32, i32
  }
  func.func @transform_5(%arg0: i32, %arg1: i32) -> (i32, i32, i32) {
    %c0_i32 = arith.constant 0 : i32
    %c0_i32_0 = arith.constant 0 : i32
    return %arg0, %c0_i32, %arg1 : i32, i32, i32
  }
  func.func @transform_6(%arg0: i32, %arg1: i32) -> (i32, i32, i32) {
    %c0_i32 = arith.constant 0 : i32
    %c0_i32_0 = arith.constant 0 : i32
    return %arg0, %c0_i32, %arg1 : i32, i32, i32
  }
}

</mosaic_0001>

<bundles_post_ra>
// kernel: tpu_custom_call.1
= control target key start
LH: loop header
LB: loop body
LE: loop exit
PB: predicated region body
PF: predicated region fallthrough
CT: control target
= control target key end

     0   :  { %s1428_s0 = inlined_call_operand.hbm [shape: f32[6], index: 0, kind: input, shape index: {}]   ;;  %s1429_s1 = inlined_call_operand.hbm [shape: f32[2,256], index: 1, kind: input, shape index: {}]   ;;  %s1430_s2 = inlined_call_operand.hbm [shape: f32[2,4,256], index: 2, kind: input, shape index: {}]   ;;  %s1431_s3 = inlined_call_operand.vmem [shape: f32[2,1,256], index: 3, kind: input, shape index: {}]   ;;  %s1432_s4 = inlined_call_operand.hbm [shape: f32[2,4,256], index: 4, kind: input, shape index: {}]   ;;  %s1433_s5 = inlined_call_operand.hbm [shape: f32[2,8,256], index: 5, kind: output, shape index: {0}]   ;;  %s1434_s6 = inlined_call_operand.vmem [shape: f32[2,3,256], index: 6, kind: output, shape index: {1}]  }
   0x1   :  { %1454 = sst [smem:[#allocation29_spill]] %s1428_s0 }
   0x2   :  { %1455 = sst [smem:[#allocation30_spill]] %s1429_s1 }
   0x3   :  { %1456 = sst [smem:[#allocation31_spill]] %s1430_s2 }
   0x4   :  { %1457 = sst [smem:[#allocation32_spill]] %s1431_s3 }
   0x5   :  { %1458 = sst [smem:[#allocation33_spill]] %s1432_s4 }
   0x6   :  { %1459 = sst [smem:[#allocation34_spill]] %s1433_s5 }
   0x7   :  { %1460 = sst [smem:[#allocation35_spill]] %s1434_s6 }
   0x8   :  { %12 = vsyncpa [#allocation6], 0 }
   0x9   :  { %13 = vsyncpa [#allocation4], 0 }
   0xa   :  { %15 = vsyncpa [#allocation4 + $0x1], 0 }
   0xb   :  { %16 = vsyncpa [#allocation9], 0 }
   0xc   :  { %18 = vsyncpa [#allocation9 + $0x1], 0 }
   0xd   :  { %19 = vsyncpa [#allocation5], 0 }
   0xe   :  { %21 = vsyncpa [#allocation5 + $0x1], 0  ;;  %s1047_s21 = smov 0   ;;  %s1049_s22 = smov 0  }
   0xf   :  { %s1051_s23 = smov 0   ;;  %s1053_s24 = smov 0  }
  0x10   :  { %s1055_s25 = smov 0   ;;  %s1057_s26 = smov 0  }
  0x11   :  { %s1059_s27 = smov 0   ;;  %s1061_s28 = smov 0  }
  0x12   :  { %s1063_s29 = smov 0   ;;  %s1065_s30 = smov 0  }
  0x13   :  { %s1067_s7 = smov 0  }
  0x14 LB: > { %1461 = sst [smem:[#allocation20_spill]] %s965_s21  ;;  %s625_s8 = sadd.s32 4294967295, %s1005_s7   ;;  %s1005_s7 = sphi %s1067_s7, %s27_s7   ;;  %s1001_s30 = sphi %s1065_s30, %s1509_s30   ;;  %s997_s29 = sphi %s1063_s29, %s1508_s29   ;;  %s993_s28 = sphi %s1061_s28, %s1507_s28   ;;  %s989_s27 = sphi %s1059_s27, %s1506_s27   ;;  %s985_s26 = sphi %s1057_s26, %s1505_s26   ;;  %s981_s25 = sphi %s1055_s25, %s1514_s25   ;;  %s977_s24 = sphi %s1053_s24, %s1513_s24   ;;  %s973_s23 = sphi %s1051_s23, %s1512_s23   ;;  %s969_s22 = sphi %s1049_s22, %s1511_s22   ;;  %s965_s21 = sphi %s1047_s21, %s1510_s21  }
  0x15   : > { %1462 = sst [smem:[#allocation21_spill]] %s985_s26  ;;  %s626_s9 = sadd.s32 4294967294, %s1005_s7  }
  0x16   : > { %1463 = sst [smem:[#allocation22_spill]] %s997_s29  ;;  %p80_p0 = scmp.ne.s32.totalorder %s981_s25, %s977_s24 }
  0x17   : > { %1464 = sst [smem:[#allocation23_spill]] %s1001_s30  ;;  %p1103_p1 = scmp.eq.s32.totalorder %s625_s8, 0 }
  0x18   : > { %p108_p2 = scmp.ne.s32.totalorder %s969_s22, %s965_s21  ;;  %p1109_p3 = scmp.eq.s32.totalorder %s625_s8, 3 }
  0x19   : > { %s1465_s10 = scalar_select %p1103_p1, 1, 0 }
  0x1a   : > { %s1466_s11 = scalar_select %p1109_p3, 1, 0 }
  0x1b   : > { %p1115_p4 = por %p1103_p1, %p80_p0  ;;  %p168_p5 = scmp.eq.s32.totalorder %s626_s9, 3 }
  0x1c   : > { %p1121_p6 = por %p108_p2, %p1103_p1  ;;  %p627_p7 = scmp.ge.s32.totalorder %s1005_s7, 1 }
  0x1d   : > { %s1467_s12 = scalar_select %p1115_p4, 1, 0 }
  0x1e   : > { %s1468_s13 = scalar_select %p1121_p6, 1, 0 }
  0x1f   : > { %p1126_p8 = por %p168_p5, %p108_p2  ;;  %p203_p9 = scmp.lt.s32.totalorder %s1005_s7, 5 }
  0x20   : > { %s36_s16 = sadd.s32 1, %s997_s29  ;;  %s67_s19 = sadd.s32 1, %s985_s26 }
  0x21   : > { %s1469_s14 = scalar_select %p1126_p8, 1, 0 }
  0x22   : > { %p1131_p10 = pnand %p627_p7, %p203_p9  ;;  %p1144_p13 = scmp.ge.s32.totalorder %s36_s16, 2 }
  0x23   : > { %1470 = sst [smem:[#allocation24_spill]] %s1469_s14  ;;  %p74_p0 = scmp.ne.s32.totalorder %s985_s26, %s981_s25 }
  0x24   : > { %s1471_s15 = scalar_select %p1131_p10, 1, 0 }
  0x25   : > { %p667_p11 = pneg %p1131_p10  ;;  %p1441_p2 = scmp.eq.s32.totalorder %s1005_s7, 0 }
  0x26   : > { %s1474_s0 = sld [smem:[#allocation29_spill]] }
  0x27   : > { %p1140_p12 = pnand %p667_p11, %p1103_p1 }
  0x29   : > { %p778_p7 = pneg %p1140_p12 }
  0x2c   : > { %s776_s8 = scalar_lea.hbm %s1474_s0, 16 }
  0x2d   : > { %p777_p5 = scmp.ne.s32.totalorder %s1474_s0, %s776_s8  ;;  %p783_p8 = scmp.lt.u32.totalorder %s776_s8, %s1474_s0 }
  0x2f   : > { %p779_p9 = pnand %p778_p7, %p777_p5 }
  0x31   : > { %p780_p11 = pneg %p779_p9 }
  0x33   : > { %p785_p6 = pnand %p783_p8, %p780_p11 }
  0x35   : > { %788 = shalt.err (!%p785_p6)
}
  0x36   : > { %s1007_s6 = smov [#allocation3]   ;;  %s1516_s16 = smov (%p1144_p13, %s36_s16), 0 }
  0x37   : > { %670 = dma.hbm_to_smem (!%p1140_p12), %s1474_s0, 16, %s1007_s6, [#allocation6]  }
  0x38   : > { %1475 = sst [smem:[#allocation25_spill]] %s1516_s16  ;;  %p76_p6 = por %p1441_p2, %p74_p0 }
  0x39   : > { %p1440_p8 = scmp.lt.s32.totalorder %s1005_s7, 4  ;;  %s1180_s3 = ssub.s32 %s997_s29, %s1516_s16 }
  0x3a   : > { %s225_s5 = sand.u32 1, %s985_s26   ;;  %p65_p5 = scmp.eq.s32.totalorder %s1180_s3, 0 }
  0x3b   : > { %s630_s21 = sshll.u32 %s225_s5, 1  ;;  %s631_s14 = sshll.u32 %s997_s29, 5 }
  0x3c   : > { %s1186_s17 = scalar_select %p65_p5, %s985_s26, %s67_s19  }
  0x3d   : > { %s1477_s1 = sld [smem:[#allocation30_spill]]  ;;  %s229_s9 = scalar_lea.vmem [#allocation7], %s630_s21 }
  0x3e   : > { %1476 = sst [smem:[#allocation26_spill]] %s1186_s17  ;;  %s236_s20 = sshll.u32 %s229_s9, 4  ;;  %s1199_s20 = int_to_ptr.vmem [resolvable:$true] %s236_s20 }
  0x3f   : > { %p1195_p12 = pnand %p1440_p8, %p76_p6  ;;  %s226_s19 = scalar_lea.sflag [#allocation4], %s225_s5 }
  0x41   : > { %p791_p7 = pneg %p1195_p12 }
  0x43   : > { %s1191_s6 = scalar_lea.hbm %s1477_s1, %s631_s14  ;;  %s794_s24 = scalar_lea.hbm %s1477_s1, 64 }
  0x44   : > { %s789_s16 = scalar_lea.hbm %s1191_s6, 32  ;;  %p795_p6 = scmp.lt.u32.totalorder %s1191_s6, %s1477_s1 }
  0x45   : > { %p790_p0 = scmp.ne.s32.totalorder %s1191_s6, %s789_s16  ;;  %p796_p5 = scmp.lt.u32.totalorder %s794_s24, %s789_s16 }
  0x46   : > { %p798_p2 = scmp.lt.u32.totalorder %s789_s16, %s1191_s6 }
  0x47   : > { %p792_p9 = pnand %p791_p7, %p790_p0  ;;  %p797_p8 = por %p796_p5, %p795_p6 }
  0x49   : > { %p793_p11 = pneg %p792_p9  ;;  %p799_p4 = por %p798_p2, %p797_p8 }
  0x4b   : > { %p800_p1 = pnand %p799_p4, %p793_p11 }
  0x4d   : > { %803 = shalt.err (!%p800_p1)
}
  0x4e   : > { %s804_s5 = scalar_lea.vmem %s1199_s20, 32  ;;  %s1008_s21 = smov [#allocation7]  }
  0x4f   : > { %p805_p0 = scmp.ne.s32.totalorder %s1199_s20, %s804_s5  ;;  %s809_s14 = sshll.u32 %s1008_s21, 4  ;;  %s810_s14 = int_to_ptr.vmem [resolvable:$false] %s809_s14 }
  0x50   : > { %s811_s8 = scalar_lea.vmem %s810_s14, 64  ;;  %p812_p3 = scmp.lt.s32.totalorder %s1199_s20, %s810_s14 }
  0x51   : > { %p807_p9 = pnand %p805_p0, %p791_p7  ;;  %p813_p6 = scmp.lt.s32.totalorder %s811_s8, %s804_s5 }
  0x53   : > { %p808_p10 = pneg %p807_p9  ;;  %p814_p5 = por %p813_p6, %p812_p3 }
  0x55   : > { %p815_p2 = pnand %p814_p5, %p808_p10 }
  0x57   : > { %818 = shalt.err (!%p815_p2)
}
  0x58   : > { %674 = dma.hbm_to_vmem [thread:$0]  (!%p1195_p12), %s1191_s6, 32, %s1199_s20, %s226_s19  }
  0x59   : > { %s39_s16 = sadd.s32 1, %s1001_s30  ;;  %s95_s24 = sadd.s32 1, %s973_s23 }
  0x5a   : > { %s1518_s16 = smov (!%p1144_p13, %s39_s16), %s1001_s30  ;;  %p102_p1 = scmp.ne.s32.totalorder %s973_s23, %s969_s22 }
  0x5b   : > { %s243_s0 = sand.u32 1, %s973_s23   ;;  %p41_p3 = scmp.ge.s32.totalorder %s1518_s16, 2 }
  0x5c   : > { %p1479_p4 = scmp.eq.s32.totalorder %s1005_s7, 0  ;;  %p1481_p8 = scmp.ne.s32.totalorder %s1466_s11, 0 }
  0x5d   : > { %s1520_s16 = smov (%p41_p3, %s1518_s16), 0  ;;  %s632_s18 = sshll.u32 %s243_s0, 2 }
  0x5e   : > { %p1236_p10 = por %p102_p1, %p1479_p4  ;;  %p1242_p7 = por %p1481_p8, %p102_p1 }
  0x5f   : > { %1484 = sst [smem:[#allocation28_spill]] %s1520_s16  ;;  %s633_s6 = sshll.u32 %s1001_s30, 1 }
  0x60   : > { %s1482_s5 = scalar_select %p1242_p7, 1, 0 }
  0x61   : > { %s90_s20 = ssub.s32 %s1001_s30, %s1520_s16  ;;  %s252_s21 = sadd.s32 %s997_s29, %s633_s6 }
  0x62   : > { %1483 = sst [smem:[#allocation27_spill]] %s1482_s5  ;;  %s92_s19 = sor.u32 %s90_s20, %s1180_s3 }
  0x63   : > { %p93_p13 = scmp.eq.s32.totalorder %s92_s19, 0  ;;  %s634_s14 = sshll.u32 %s252_s21, 6 }
  0x64   : > { %s1485_s2 = sld [smem:[#allocation31_spill]]  ;;  %s247_s11 = scalar_lea.vmem [#allocation8], %s632_s18 }
  0x65   : > { %s256_s26 = sshll.u32 %s247_s11, 4  ;;  %p1486_p12 = scmp.lt.s32.totalorder %s1005_s7, 4  ;;  %s1261_s26 = int_to_ptr.vmem [resolvable:$true] %s256_s26 }
  0x66   : > { %s1259_s5 = scalar_select %p93_p13, %s973_s23, %s95_s24  }
  0x67   : > { %p1267_p11 = pnand %p1486_p12, %p1236_p10  ;;  %s244_s1 = scalar_lea.sflag [#allocation9], %s243_s0 }
  0x69   : > { %p821_p9 = pneg %p1267_p11 }
  0x6a   : > { %s1256_s17 = scalar_lea.hbm %s1485_s2, %s634_s14  ;;  %s824_s9 = scalar_lea.hbm %s1485_s2, 256 }
  0x6b   : > { %s819_s6 = scalar_lea.hbm %s1256_s17, 64  ;;  %p825_p2 = scmp.lt.u32.totalorder %s1256_s17, %s1485_s2 }
  0x6c   : > { %p820_p0 = scmp.ne.s32.totalorder %s1256_s17, %s819_s6  ;;  %p826_p1 = scmp.lt.u32.totalorder %s824_s9, %s819_s6 }
  0x6d   : > { %p828_p4 = scmp.lt.u32.totalorder %s819_s6, %s1256_s17 }
  0x6e   : > { %p822_p6 = pnand %p821_p9, %p820_p0  ;;  %p827_p3 = por %p826_p1, %p825_p2 }
  0x70   : > { %p823_p5 = pneg %p822_p6  ;;  %p829_p10 = por %p828_p4, %p827_p3 }
  0x72   : > { %p830_p8 = pnand %p829_p10, %p823_p5 }
  0x74   : > { %833 = shalt.err (!%p830_p8)
}
  0x75   : > { %s834_s0 = scalar_lea.vmem %s1261_s26, 64  ;;  %s1009_s21 = smov [#allocation8]  }
  0x76   : > { %p835_p13 = scmp.ne.s32.totalorder %s1261_s26, %s834_s0  ;;  %s839_s14 = sshll.u32 %s1009_s21, 4  ;;  %s840_s14 = int_to_ptr.vmem [resolvable:$false] %s839_s14 }
  0x77   : > { %s841_s8 = scalar_lea.vmem %s840_s14, 128  ;;  %p842_p6 = scmp.lt.s32.totalorder %s1261_s26, %s840_s14 }
  0x78   : > { %p837_p12 = pnand %p835_p13, %p821_p9  ;;  %p843_p2 = scmp.lt.s32.totalorder %s841_s8, %s834_s0 }
  0x7a   : > { %p838_p0 = pneg %p837_p12  ;;  %p844_p1 = por %p843_p2, %p842_p6 }
  0x7c   : > { %p845_p3 = pnand %p844_p1, %p838_p0 }
  0x7e   : > { %848 = shalt.err (!%p845_p3)
}
  0x7f   : > { %677 = dma.hbm_to_vmem [thread:$0]  (!%p1267_p11), %s1256_s17, 64, %s1261_s26, %s244_s1  }
  0x80   : > { %p1488_p5 = scmp.ne.s32.totalorder %s1471_s15, 0 }
  0x81   : > { %p1489_p9 = scmp.ne.s32.totalorder (!%p1488_p5), %s1465_s10, 0 }
  0x82   : > { %275 = sbr.rel (%p1488_p5) target bundleno = 227 (0xe3), region = 36 }
  0x89   : > { %946 = dma.done.wait (%p1489_p9), [#allocation6], 16  }
  0x8a   : > { %948 = vsyncadd (%p1489_p9), [#allocation6], 4294967280  ;;  %s281_s11 = sand.u32 1, %s981_s25   ;;  %p1490_p4 = scmp.ne.s32.totalorder %s1467_s12, 0 }
  0x8b   : > { %s1303_s6 = sshll.u32 %s281_s11, 1  ;;  %s282_s24 = scalar_lea.sflag [#allocation4], %s281_s11 }
  0x8c   : > { %950 = dma.done.wait (%p1490_p4), %s282_s24, 32  }
  0x8d   : > { %952 = vsyncadd (%p1490_p4), %s282_s24, 4294967264  ;;  %s1311_s26 = sand.u32 1, %s969_s22   ;;  %p1491_p11 = scmp.ne.s32.totalorder %s1468_s13, 0 }
  0x8e   : > { %s638_s10 = sshll.u32 %s1311_s26, 2  ;;  %s291_s15 = scalar_lea.sflag [#allocation9], %s1311_s26 }
  0x8f   : > { %s1315_s17 = scalar_lea.vmem [#allocation8], %s638_s10 }
  0x90   : > { %954 = dma.done.wait (%p1491_p11), %s291_s15, 64  }
  0x91   : > { %956 = vsyncadd (%p1491_p11), %s291_s15, 4294967232 }
  0x92   : > { %299 = sfence }
  0x93   : > { %s639_s12 = sshll.u32 %s1311_s26, 3  ;;  %s648_s1 = sshll.u32 %s989_s27, 7  ;;  %v406_v0 = vlaneseq }
  0x94   : > { %s364_s18 = sshra.s32 %s648_s1, 7  ;;  %s1450_s9 = sshll.u32 %s993_s28, 1 }
  0x95   : > { %s1324_s20 = scalar_lea.vmem [#allocation10], %s639_s12  ;;  %s367_s0 = sadd.s32 %s1450_s9, %s364_s18 }
  0x96   : > { %s370_s19 = scalar_lea.vmem %s1324_s20, 4 [#allocation10]  ;;  %s650_s14 = sshll.u32 %s367_s0, 6 }
  0x97   : > { %s378_s21 = sshll.u32 %s370_s19, 4  ;;  %s1492_s4 = sld [smem:[#allocation33_spill]]  ;;  %s379_s21 = int_to_ptr.vmem [resolvable:$true] %s378_s21 }
  0x98   : > { %p342_p10 = scmp.lt.s32.totalorder %s993_s28, 1 }
  0x9d   : > { %s369_s11 = scalar_lea.hbm %s1492_s4, %s650_s14  ;;  %s851_s12 = scalar_lea.hbm %s1492_s4, 256 }
  0x9e   : > { %s849_s24 = scalar_lea.hbm %s369_s11, 64  ;;  %p852_p13 = scmp.lt.u32.totalorder %s369_s11, %s1492_s4 }
  0x9f   : > { %p850_p8 = scmp.ne.s32.totalorder %s369_s11, %s849_s24  ;;  %p853_p12 = scmp.lt.u32.totalorder %s851_s12, %s849_s24 }
  0xa0   : > { %p855_p6 = scmp.lt.u32.totalorder %s849_s24, %s369_s11 }
  0xa1   : > { %p854_p0 = por %p853_p12, %p852_p13 }
  0xa3   : > { %p856_p2 = por %p855_p6, %p854_p0 }
  0xa5   : > { %p857_p1 = pnand %p856_p2, %p850_p8 }
  0xa7   : > { %860 = shalt.err (!%p857_p1)  }
  0xa8   : > { %s861_s18 = scalar_lea.vmem %s379_s21, 64  ;;  %s1010_s19 = smov [#allocation10]  }
  0xa9   : > { %p862_p3 = scmp.ne.s32.totalorder %s379_s21, %s861_s18  ;;  %s863_s0 = sshll.u32 %s1010_s19, 4  ;;  %s1339_s0 = int_to_ptr.vmem [resolvable:$false] %s863_s0 }
  0xaa   : > { %s1449_s14 = scalar_lea.vmem %s1339_s0, 256  ;;  %p866_p5 = scmp.lt.s32.totalorder %s379_s21, %s1339_s0 }
  0xab   : > { %p867_p9 = scmp.lt.s32.totalorder %s1449_s14, %s861_s18 }
  0xad   : > { %p868_p4 = por %p867_p9, %p866_p5 }
  0xaf   : > { %p869_p11 = pnand %p868_p4, %p862_p3 }
  0xb1   : > { %872 = shalt.err (!%p869_p11)  }
  0xb2   : > { %381 = dma.hbm_to_vmem [thread:$0]  %s369_s11, 64, %s379_s21, [#allocation2]  ;;  %v407_v1 = vshrl.u32 %v406_v0, 7  ;;  %v400_v9 = vld [vmem:[%s1315_s17] sm:$0xf]  ;;  %v1011_v10 = vmov 0  }
  0xb3   : > { %s343_s3 = scalar_select %p342_p10, %s993_s28, 1 }
  0xb4   : > { %p344_p8 = scmp.lt.s32.totalorder %s989_s27, 1  ;;  %s1349_s13 = sld [smem:[#allocation3]]  ;;  %v408_v3 = vsub.s32 0, %v407_v1 }
  0xb5   : > { %s640_s8 = sshll.u32 %s343_s3, 1  ;;  %s644_s24 = sld [smem:[#allocation3 + $0x2]] }
  0xb6   : > { %s345_s10 = scalar_select %p344_p8, %s989_s27, 1 }
  0xb7   : > { %s1352_s15 = sld [smem:[#allocation3 + $0x1]]  ;;  %s645_s12 = sld [smem:[#allocation3 + $0x3]] }
  0xb8   : > { %s347_s21 = sadd.s32 %s640_s8, %s345_s10  ;;  %s646_s11 = sld [smem:[#allocation3 + $0x4]] }
  0xb9   : > { %s1493_s19 = sld [smem:[#allocation32_spill]]  ;;  %s642_s9 = sshll.u32 %s347_s21, 2 }
  0xba   : > { %s1494_s2 = scalar_lea.vmem [#allocation7], %s1303_s6  ;;  %s1495_s16 = sld [smem:[#allocation35_spill]]  ;;  %v390_v12 = vstv %s1349_s13 }
  0xbb   : > { %v382_v2 = vld [vmem:[%s1494_s2] sm:$0x1]  ;;  %s647_s29 = sld [smem:[#allocation3 + $0x5]]  ;;  %v387_v5 = vstv %s644_s24  ;;  %s1496_s8 = smov %s1494_s2 }
  0xbc   : > { %v383_v6 = vld [vmem:[%s1496_s8 + $0x1] sm:$0x1]  ;;  %v388_v8 = vsub.f32 %v382_v2, %v387_v5 }
  0xbd   : > { %v393_v13 = vstv %s645_s12  ;;  %v396_v18 = vstv %s1352_s15 }
  0xbe   : > { %v394_v16 = vsub.f32 %v383_v6, %v393_v13  ;;  %v401_v17 = vstv %s646_s11 }
  0xbf   : > { %s348_s14 = scalar_lea.vmem %s1493_s19, %s347_s21  ;;  %v402_v19 = vmul.f32 %v401_v17, %v400_v9 }
  0xc0   : > { %s356_s30 = scalar_lea.vmem %s1495_s16, %s642_s9  ;;  %v384_v4 = vld [vmem:[%s348_s14] sm:$0x1] }
  0xc1   : > { %vm385_vm0 = vcmp.gt.f32.partialorder %v384_v4, 0.0  ;;  %v403_v22 = vstv %s647_s29 }
  0xc2   : > { %v386_v7 = vsel %vm385_vm0, %v384_v4, 0.0  ;;  %v405_v11 = vsel %vm385_vm0, 1, %v1011_v10  ;;  %v404_v23 = vadd.f32 %v403_v22, %v402_v19 }
  0xc3   : > { %399 = vst [vmem:[%s356_s30 + $0x2] sm:$0x1] %v386_v7  ;;  %v409_v14 = vrot.slane %v405_v11, %v408_v3  ;;  %v389_v15 = vmul.f32 %v388_v8, %v386_v7  ;;  %v395_v21 = vmul.f32 %v394_v16, %v386_v7 }
  0xc5   : > { %v391_v20 = vmul.f32 %v390_v12, %v389_v15  ;;  %vm410_vm1 = vcmp.eq.s32.totalorder %v409_v14, 1  ;;  %v397_v24 = vmul.f32 %v396_v18, %v395_v21 }
  0xc6   : > { %v411_v25 = vsel %vm410_vm1, %v404_v23, 0.0 }
  0xc7   : > { %392 = vst [vmem:[%s356_s30] sm:$0x1] %v391_v20  ;;  %398 = vst [vmem:[%s356_s30 + $0x1] sm:$0x1] %v397_v24 }
  0xc8   : > { %412 = vst [vmem:[%s1324_s20] sm:$0xf] %v411_v25 }
  0xc9   : > { %957 = dma.done.wait [#allocation2], 64 }
  0xca   : > { %958 = vsyncadd [#allocation2], 4294967232  ;;  %s1497_s2 = sshll.u32 %s993_s28, 1  ;;  %s441_s29 = sshll.u32 %s1324_s20, 4  ;;  %s442_s29 = int_to_ptr.vmem [resolvable:$true] %s441_s29 }
  0xcb   : > { %s437_s16 = sadd.s32 %s989_s27, %s1497_s2  ;;  %s1499_s14 = sld [smem:[#allocation34_spill]] }
  0xcc   : > { %s653_s6 = sshll.u32 %s437_s16, 7  ;;  %s418_s30 = scalar_lea.sflag [#allocation5], %s1311_s26 }
  0xcd   : > { %s873_s24 = scalar_lea.vmem %s442_s29, 128  ;;  %p880_p0 = scmp.lt.s32.totalorder %s442_s29, %s1339_s0 }
  0xce   : > { %p874_p10 = scmp.ne.s32.totalorder %s442_s29, %s873_s24  ;;  %s1500_s28 = scalar_lea.vmem %s1339_s0, 256 }
  0xcf   : > { %p881_p6 = scmp.lt.s32.totalorder %s1500_s28, %s873_s24 }
  0xd0   : > { %p875_p13 = pnand %p874_p10, %p1242_p7 }
  0xd1   : > { %s439_s13 = scalar_lea.hbm %s1499_s14, %s653_s6  ;;  %p882_p2 = por %p881_p6, %p880_p0 }
  0xd2   : > { %p876_p12 = pneg %p875_p13 }
  0xd4   : > { %p883_p1 = pnand %p882_p2, %p876_p12 }
  0xd6   : > { %886 = shalt.err (!%p883_p1)
}
  0xd7   : > { %s887_s27 = scalar_lea.hbm %s439_s13, 128  ;;  %s891_s26 = scalar_lea.hbm %s1499_s14, 512 }
  0xd8   : > { %p888_p3 = scmp.ne.s32.totalorder %s439_s13, %s887_s27  ;;  %p892_p4 = scmp.lt.u32.totalorder %s439_s13, %s1499_s14 }
  0xd9   : > { %p893_p11 = scmp.lt.u32.totalorder %s891_s26, %s887_s27  ;;  %p895_p10 = scmp.lt.u32.totalorder %s887_s27, %s439_s13 }
  0xda   : > { %p889_p5 = pnand %p888_p3, %p1242_p7 }
  0xdb   : > { %p894_p8 = por %p893_p11, %p892_p4 }
  0xdc   : > { %p890_p9 = pneg %p889_p5 }
  0xdd   : > { %p896_p13 = por %p895_p10, %p894_p8 }
  0xdf   : > { %p897_p12 = pnand %p896_p13, %p890_p9 }
  0xe1   : > { %900 = shalt.err (!%p897_p12)
}
  0xe2   : > { %665 = dma.vmem_to_hbm [thread:$0]  (%p1242_p7), %s442_s29, 128, %s439_s13, %s418_s30  }
  0xe3 PF: > { %s1501_s0 = sld [smem:[#allocation20_spill]]  ;;  %s1502_s21 = sld [smem:[#allocation24_spill]] }
  0xe4   : > { %p685_p0 = scmp.ge.s32.totalorder %s1005_s7, 2 }
  0xe9   : > { %s456_s11 = sand.u32 1, %s1501_s0   ;;  %p1503_p6 = scmp.ne.s32.totalorder %s1502_s21, 0 }
  0xea   : > { %s457_s1 = scalar_lea.sflag [#allocation5], %s456_s11 }
  0xeb   : > { %p679_p2 = pnand %p685_p0, %p1503_p6 }
  0xed   : > { %960 = dma.done.wait (!%p679_p2), %s457_s1, 128  }
  0xee   : > { %962 = vsyncadd (!%p679_p2), %s457_s1, 4294967168  ;;  %s27_s7 = sadd.s32 1, %s1005_s7   ;;  %s1504_s18 = sld [smem:[#allocation21_spill]] }
  0xef   : > { %p24_p1 = scmp.ge.s32.totalorder %s27_s7, 6   ;;  %s1505_s26 = sld [smem:[#allocation26_spill]] }
  0xf0   : > { %s1506_s27 = sld [smem:[#allocation22_spill]]  ;;  %s1507_s28 = sld [smem:[#allocation23_spill]] }
  0xf1   : > { %s1508_s29 = sld [smem:[#allocation25_spill]]  ;;  %s1509_s30 = sld [smem:[#allocation28_spill]] }
  0xf2   : > { %s1510_s21 = smov %s969_s22  ;;  %s1511_s22 = smov %s973_s23 }
  0xf3   : > { %s1512_s23 = smov %s1259_s5  ;;  %s1513_s24 = smov %s981_s25 }
  0xf4   : > { %s1514_s25 = smov %s1504_s18  ;;  %26 = sbr.rel (!%p24_p1) target bundleno = 20 (0x14), region = 120 }
  0xfb   :  { %473 = vsyncpa [#allocation4], 1 }
  0xfc   :  { %475 = vsyncpa [#allocation4 + $0x1], 1 }
  0xfd   :  { %476 = vsyncpa [#allocation9], 1 }
  0xfe   :  { %478 = vsyncpa [#allocation9 + $0x1], 1 }
  0xff   :  { %479 = vsyncpa [#allocation5], 1 }
 0x100   :  { %481 = vsyncpa [#allocation5 + $0x1], 1 }
 0x101   :  { %482 = vsyncpa [#allocation6], 1 }
 0x102   :  { %484 = vsyncpa [#allocation6 + $0x1], 1 }
 0x103   :  { %485 = vsyncmov [#allocation2] }
 0x106   :  { %s486_s5 = vpop.sfrf %485 }
 0x107   :  { %p656_p7 = scmp.ne.s32.totalorder %s486_s5, 0 }
 0x109   :  { %490 = shalt.err (%p656_p7)  }

</bundles_post_ra>
